<compile_context>
chip_gen: v7x
topology: tpu7x:2x2x1
jax: 0.10.0
libtpu: 0.0.40
codegen_flags: <defaults>
</compile_context>

<pallas_src>
import jax
import jax.numpy as jnp
from jax.experimental import pallas as pl
from jax.experimental.pallas import tpu as pltpu


def _round_up(a, b):
    return (a + b - 1) // b * b


def linear_kernel(x_ref, wt_ref, b_ref, h_ref):
    # h = x @ W^T + b : bf16 operands on the MXU, f32 accumulation,
    # bias add in f32, stored as bf16 for the second matmul.
    h = jnp.dot(x_ref[...], wt_ref[...], preferred_element_type=jnp.float32)
    h = h + b_ref[...]
    h_ref[...] = h.astype(h_ref.dtype)


def gram_sigmoid_kernel(hi_ref, hj_ref, adj_ref):
    # logits = h_i @ h_j^T with the transpose folded into the contraction
    # (contract dim 1 of both operands -> no XLU transpose, no temporary).
    logits = jax.lax.dot_general(
        hi_ref[...], hj_ref[...],
        dimension_numbers=(((1,), (1,)), ((), ())),
        preferred_element_type=jnp.float32)
    # sigmoid(x) = 0.5 * tanh(0.5 * x) + 0.5  -> one EUP transcendental/elem.
    adj_ref[...] = (0.5 * jnp.tanh(0.5 * logits) + 0.5).astype(adj_ref.dtype)


def edge_predictor(x, weight, bias, *, out_dtype=jnp.float32):
    """x: [N, D] f32, weight: [D, D] (PyTorch layout: out x in), bias: [D]."""
    N, D = x.shape

    # Pad to lane/MXU-friendly sizes (multiples of 128); zero padding is
    # exact for the real [:N, :N] output region, which we slice at the end.
    DP = _round_up(D, 128)
    NP = _round_up(N, 128)
    tile = 256 if NP % 256 == 0 else 128   # 256-wide tiles fill the v6e/v7x MXU
    tm = tn = tile

    # bf16 MXU inputs (f32 accumulation inside the kernels); bias stays f32.
    x_p = jnp.pad(x, ((0, NP - N), (0, DP - D))).astype(jnp.bfloat16)
    wt_p = jnp.pad(weight.T, ((0, DP - D), (0, DP - D))).astype(jnp.bfloat16)
    b_p = jnp.pad(bias, (0, DP - D)).astype(jnp.float32).reshape(1, DP)

    cparams = pltpu.CompilerParams(
        dimension_semantics=("parallel",),
        vmem_limit_bytes=48 * 1024 * 1024)

    # Stage 1: h = x @ W^T + b, tiled over row blocks.
    h = pl.pallas_call(
        linear_kernel,
        out_shape=jax.ShapeDtypeStruct((NP, DP), jnp.bfloat16),
        grid_spec=pl.GridSpec(
            grid=(NP // tm,),
            in_specs=[
                pl.BlockSpec((tm, DP), lambda i: (i, 0)),
                pl.BlockSpec((DP, DP), lambda i: (0, 0)),
                pl.BlockSpec((1, DP), lambda i: (0, 0)),
            ],
            out_specs=pl.BlockSpec((tm, DP), lambda i: (i, 0)),
        ),
        compiler_params=cparams,
    )(x_p, wt_p, b_p)

    # Stage 2: adj = sigmoid(h @ h^T), one [tm, tn] lane-dense tile per step.
    adj_p = pl.pallas_call(
        gram_sigmoid_kernel,
        out_shape=jax.ShapeDtypeStruct((NP, NP), out_dtype),
        grid_spec=pl.GridSpec(
            grid=(NP // tm, NP // tn),
            in_specs=[
                pl.BlockSpec((tm, DP), lambda i, j: (i, 0)),
                pl.BlockSpec((tn, DP), lambda i, j: (j, 0)),
            ],
            out_specs=pl.BlockSpec((tm, tn), lambda i, j: (i, j)),
        ),
        compiler_params=pltpu.CompilerParams(
            dimension_semantics=("parallel", "parallel"),
            vmem_limit_bytes=48 * 1024 * 1024),
    )(h, h)

    return adj_p[:N, :N]


if __name__ == "__main__":
    # Small shapes consistent with the module: N nodes, nembed hidden dim.
    # N=300, nembed=96 exercise padding (-> 384, 128) and a multi-tile grid.
    N, nembed = 300, 96

    key = jax.random.PRNGKey(0)
    kx, kw, kb = jax.random.split(key, 3)

    # Deterministic parameter init, matching nn.init.normal_(weight, std=0.05)
    # and PyTorch's default Linear bias init U(-1/sqrt(fan_in), 1/sqrt(fan_in)).
    x = jax.random.normal(kx, (N, nembed), dtype=jnp.float32)
    weight = 0.05 * jax.random.normal(kw, (nembed, nembed), dtype=jnp.float32)
    bound = 1.0 / jnp.sqrt(nembed)
    bias = jax.random.uniform(kb, (nembed,), dtype=jnp.float32,
                              minval=-bound, maxval=bound)

    adj = edge_predictor(x, weight, bias)
    jax.block_until_ready(adj)

    # Reference check in plain JAX f32 (same math; tolerance relaxed for the
    # bf16 MXU inputs — outputs are sigmoid-bounded in (0, 1)).
    h_ref = x @ weight.T + bias
    adj_ref = jax.nn.sigmoid(h_ref @ h_ref.T)
    assert adj.shape == (N, N)
    assert jnp.allclose(adj, adj_ref, atol=2e-2, rtol=0.0), (
        float(jnp.max(jnp.abs(adj - adj_ref))))

    print("KERNEL_OK")
</pallas_src>

<mosaic_0001>
module attributes {stable_mosaic.version = 11 : i64} {
  func.func @linear_kernel(%arg0: i32, %arg1: memref<128x128xbf16, #tpu.memory_space<vmem>>, %arg2: memref<128x128xbf16, #tpu.memory_space<vmem>>, %arg3: memref<1x128xf32, #tpu.memory_space<vmem>>, %arg4: memref<128x128xbf16, #tpu.memory_space<vmem>>) attributes {dimension_semantics = [#tpu.dimension_semantics<parallel>], iteration_bounds = array<i64: 3>, scalar_prefetch = 0 : i64, scratch_operands = 0 : i64, tpu.core_type = #tpu.core_type<tc>, window_params = [{transform_indices = @transform_0, window_bounds = array<i64: 128, 128>}, {pipeline_mode = #tpu.pipeline_mode<synchronous>, transform_indices = @transform_1, window_bounds = array<i64: 128, 128>}, {pipeline_mode = #tpu.pipeline_mode<synchronous>, transform_indices = @transform_2, window_bounds = array<i64: 1, 128>}, {transform_indices = @transform_3, window_bounds = array<i64: 128, 128>}]} {
    %c0 = arith.constant 0 : index
    %c0_0 = arith.constant 0 : index
    %0 = vector.load %arg1[%c0, %c0_0] : memref<128x128xbf16, #tpu.memory_space<vmem>>, vector<128x128xbf16>
    %c0_1 = arith.constant 0 : index
    %c0_2 = arith.constant 0 : index
    %1 = vector.load %arg2[%c0_1, %c0_2] : memref<128x128xbf16, #tpu.memory_space<vmem>>, vector<128x128xbf16>
    %cst = arith.constant dense<0.000000e+00> : vector<128x128xf32>
    %2 = tpu.matmul %0, %1, %cst {dimension_numbers = #tpu.dot_dimension_numbers<[1], [0], [0], [1], [0, 0, 1, 1], [], []>} : vector<128x128xbf16>, vector<128x128xbf16>, vector<128x128xf32> -> vector<128x128xf32>
    %c0_3 = arith.constant 0 : index
    %c0_4 = arith.constant 0 : index
    %3 = vector.load %arg3[%c0_3, %c0_4] : memref<1x128xf32, #tpu.memory_space<vmem>>, vector<1x128xf32>
    %4 = vector.broadcast %3 : vector<1x128xf32> to vector<128x128xf32>
    %5 = arith.addf %2, %4 : vector<128x128xf32>
    %6 = arith.truncf %5 : vector<128x128xf32> to vector<128x128xbf16>
    %c0_5 = arith.constant 0 : index
    %c0_6 = arith.constant 0 : index
    %7 = vector.load %arg4[%c0_5, %c0_6] : memref<128x128xbf16, #tpu.memory_space<vmem>>, vector<128x128xbf16>
    tpu.vector_store %arg4[%c0_5, %c0_6], %6 {strides = array<i32>} : memref<128x128xbf16, #tpu.memory_space<vmem>>, vector<128x128xbf16>,
    return
  }
  func.func @transform_0(%arg0: i32) -> (i32, i32) {
    %c0_i32 = arith.constant 0 : i32
    %c0_i32_0 = arith.constant 0 : i32
    return %arg0, %c0_i32 : i32, i32
  }
  func.func @transform_1(%arg0: i32) -> (i32, i32) {
    %c0_i32 = arith.constant 0 : i32
    %c0_i32_0 = arith.constant 0 : i32
    %c0_i32_1 = arith.constant 0 : i32
    return %c0_i32, %c0_i32_0 : i32, i32
  }
  func.func @transform_2(%arg0: i32) -> (i32, i32) {
    %c0_i32 = arith.constant 0 : i32
    %c0_i32_0 = arith.constant 0 : i32
    %c0_i32_1 = arith.constant 0 : i32
    return %c0_i32, %c0_i32_0 : i32, i32
  }
  func.func @transform_3(%arg0: i32) -> (i32, i32) {
    %c0_i32 = arith.constant 0 : i32
    %c0_i32_0 = arith.constant 0 : i32
    return %arg0, %c0_i32 : i32, i32
  }
}

</mosaic_0001>

<bundles_post_ra>
// kernel: tpu_custom_call.1
= control target key start
LH: loop header
LB: loop body
LE: loop exit
PB: predicated region body
PF: predicated region fallthrough
CT: control target
= control target key end

     0   :  { %8 = vsyncpa [#allocation3], 0  ;;  %s1254_s0 = inlined_call_operand.hbm [shape: bf16[384,128], index: 0, kind: input, shape index: {}]   ;;  %s1255_s1 = inlined_call_operand.hbm [shape: bf16[128,128], index: 1, kind: input, shape index: {}]   ;;  %s1256_s2 = inlined_call_operand.vmem [shape: f32[1,128], index: 2, kind: input, shape index: {}]   ;;  %s1257_s3 = inlined_call_operand.hbm [shape: bf16[384,128], index: 3, kind: output, shape index: {}]  }
   0x1   :  { %10 = vsyncpa [#allocation3 + $0x1], 0 }
   0x2   :  { %11 = vsyncpa [#allocation6], 0 }
   0x3   :  { %12 = vsyncpa [#allocation4], 0 }
   0x4   :  { %14 = vsyncpa [#allocation4 + $0x1], 0  ;;  %s1028_s12 = smov 0   ;;  %s1030_s13 = smov 0  }
   0x5   :  { %s1032_s14 = smov 0   ;;  %s1034_s15 = smov 0  }
   0x6 LB: > { %s1049_s16 = sadd.s32 4294967295, %s999_s15   ;;  %s616_s17 = sadd.s32 4294967294, %s999_s15   ;;  %s999_s15 = sphi %s1034_s15, %s1276_s15   ;;  %s995_s14 = sphi %s1032_s14, %s1275_s14   ;;  %s991_s13 = sphi %s1030_s13, %s1274_s13   ;;  %s987_s12 = sphi %s1028_s12, %s1273_s12  }
   0x7   : > { %p40_p0 = scmp.ne.s32.totalorder %s991_s13, %s987_s12  ;;  %p1258_p1 = scmp.eq.s32.totalorder %s1049_s16, 0 }
   0x8   : > { %p112_p3 = scmp.eq.s32.totalorder %s616_s17, 2  ;;  %p617_p5 = scmp.ge.s32.totalorder %s999_s15, 1 }
   0x9   : > { %p1058_p4 = por %p1258_p1, %p40_p0  ;;  %p119_p7 = scmp.lt.s32.totalorder %s999_s15, 4 }
   0xa   : > { %p1063_p6 = por %p112_p3, %p40_p0  ;;  %s1001_s21 = smov [#allocation5]  }
   0xb   : > { %s1261_s18 = scalar_select %p1058_p4, 1, 0 }
   0xc   : > { %s1262_s19 = scalar_select %p1063_p6, 1, 0 }
   0xd   : > { %p1068_p8 = pnand %p617_p5, %p119_p7  ;;  %s131_s22 = sshll.u32 %s1001_s21, 4  ;;  %s132_s22 = int_to_ptr.vmem [resolvable:$true] %s131_s22 }
   0xe   : > { %s1081_s24 = sadd.s32 1, %s999_s15   ;;  %s27_s25 = sadd.s32 1, %s995_s14 }
   0xf   : > { %s1263_s20 = scalar_select %p1068_p8, 1, 0 }
  0x10   : > { %p802_p9 = pneg %p1068_p8  ;;  %s24_s26 = ssub.s32 %s999_s15, %s1081_s24 }
  0x11   : > { %s871_s29 = scalar_lea.hbm %s1255_s1, 1024 }
  0x12   : > { %p1076_p10 = pnand %p802_p9, %p1258_p1  ;;  %p872_p11 = scmp.ne.s32.totalorder %s1255_s1, %s871_s29 }
  0x13   : > { %p878_p3 = scmp.lt.u32.totalorder %s871_s29, %s1255_s1 }
  0x14   : > { %p873_p12 = pneg %p1076_p10 }
  0x16   : > { %p874_p13 = pnand %p873_p12, %p872_p11 }
  0x18   : > { %p875_p0 = pneg %p874_p13 }
  0x1a   : > { %p880_p5 = pnand %p878_p3, %p875_p0 }
  0x1c   : > { %883 = shalt.err (!%p880_p5)
}
  0x1d   : > { %s884_s7 = scalar_lea.vmem %s132_s22, 1024  ;;  %p892_p2 = scmp.lt.s32.totalorder %s132_s22, %s132_s22 }
  0x1e   : > { %p885_p7 = scmp.ne.s32.totalorder %s132_s22, %s884_s7  ;;  %p893_p6 = scmp.lt.s32.totalorder %s884_s7, %s884_s7 }
  0x20   : > { %p887_p9 = pnand %p885_p7, %p873_p12  ;;  %p894_p4 = por %p893_p6, %p892_p2 }
  0x22   : > { %p888_p1 = pneg %p887_p9 }
  0x24   : > { %p895_p8 = pnand %p894_p4, %p888_p1 }
  0x26   : > { %898 = shalt.err (!%p895_p8)
}
  0x27   : > { %s1002_s8 = smov 64   ;;  %s1003_s9 = smov 4  }
  0x28   : > { %805 = dma.hbm_to_vmem [thread:$0]  (!%p1076_p10), %s1255_s1, 1024, %s132_s22, [#allocation6], %s1002_s8, %s1002_s8, %s1003_s9  }
  0x29   : > { %p25_p1 = scmp.eq.s32.totalorder %s24_s26, 0  ;;  %p34_p2 = scmp.ne.s32.totalorder %s995_s14, %s991_s13 }
  0x2a   : > { %p35_p4 = scmp.eq.s32.totalorder %s999_s15, 0  ;;  %p815_p6 = scmp.lt.s32.totalorder %s999_s15, 3 }
  0x2b   : > { %s1110_s17 = scalar_select %p25_p1, %s995_s14, %s27_s25  }
  0x2c   : > { %p36_p8 = por %p35_p4, %p34_p2  ;;  %p1265_p11 = scmp.eq.s32.totalorder %s1049_s16, 2 }
  0x2d   : > { %s148_s23 = sand.u32 1, %s995_s14   ;;  %s665_s27 = sshll.u32 %s999_s15, 10 }
  0x2e   : > { %p1114_p12 = por %p1265_p11, %p34_p2  ;;  %s620_s28 = sshll.u32 %s148_s23, 6 }
  0x2f   : > { %s1123_s4 = scalar_lea.hbm %s1254_s0, %s665_s27  ;;  %s152_s22 = scalar_lea.vmem [#allocation2], %s620_s28 }
  0x30   : > { %s159_s25 = sshll.u32 %s152_s22, 4  ;;  %p1125_p10 = pnand %p815_p6, %p36_p8  ;;  %s1129_s25 = int_to_ptr.vmem [resolvable:$true] %s159_s25 }
  0x31   : > { %s1131_s5 = scalar_lea.sflag [#allocation3], %s148_s23  ;;  %s899_s6 = scalar_lea.hbm %s1123_s4, 1024 }
  0x32   : > { %p900_p13 = scmp.ne.s32.totalorder %s1123_s4, %s899_s6  ;;  %p901_p0 = pneg %p1125_p10 }
  0x33   : > { %s904_s11 = scalar_lea.hbm %s1254_s0, 3072  ;;  %p905_p7 = scmp.lt.u32.totalorder %s1123_s4, %s1254_s0 }
  0x34   : > { %p902_p3 = pnand %p901_p0, %p900_p13  ;;  %p906_p9 = scmp.lt.u32.totalorder %s904_s11, %s899_s6 }
  0x35   : > { %p908_p2 = scmp.lt.u32.totalorder %s899_s6, %s1123_s4 }
  0x36   : > { %p903_p5 = pneg %p902_p3  ;;  %p907_p1 = por %p906_p9, %p905_p7 }
  0x38   : > { %p909_p4 = por %p908_p2, %p907_p1 }
  0x3a   : > { %p910_p6 = pnand %p909_p4, %p903_p5 }
  0x3c   : > { %913 = shalt.err (!%p910_p6)
}
  0x3d   : > { %s914_s23 = scalar_lea.vmem %s1129_s25, 1024  ;;  %s1004_s29 = smov [#allocation2]  }
  0x3e   : > { %p915_p8 = scmp.ne.s32.totalorder %s1129_s25, %s914_s23  ;;  %s919_s30 = sshll.u32 %s1004_s29, 4  ;;  %s920_s30 = int_to_ptr.vmem [resolvable:$false] %s919_s30 }
  0x3f   : > { %s921_s22 = scalar_lea.vmem %s920_s30, 2048  ;;  %p922_p3 = scmp.lt.s32.totalorder %s1129_s25, %s920_s30 }
  0x40   : > { %p917_p11 = pnand %p915_p8, %p901_p0  ;;  %p923_p7 = scmp.lt.s32.totalorder %s921_s22, %s914_s23 }
  0x42   : > { %p918_p13 = pneg %p917_p11  ;;  %p924_p9 = por %p923_p7, %p922_p3 }
  0x44   : > { %p925_p1 = pnand %p924_p9, %p918_p13 }
  0x46   : > { %928 = shalt.err (!%p925_p1)
}
  0x47   : > { %809 = dma.hbm_to_vmem [thread:$0]  (!%p1125_p10), %s1123_s4, 1024, %s1129_s25, %s1131_s5, %s1002_s8, %s1002_s8, %s1003_s9  }
  0x48   : > { %p1268_p0 = scmp.ne.s32.totalorder %s1263_s20, 0 }
  0x49   : > { %s1165_s6 = sand.u32 (!%p1268_p0), 1, %s991_s13   ;;  %p1269_p5 = scmp.ne.s32.totalorder (!%p1268_p0), %s1261_s18, 0 }
  0x4a   : > { %171 = sbr.rel (%p1268_p0) target bundleno = 360 (0x168), region = 32  ;;  %s624_s7 = sshll.u32 (!%p1268_p0), %s1165_s6, 6 }
  0x4b   : > { %s174_s10 = scalar_lea.sflag (!%p1268_p0), [#allocation3], %s1165_s6  ;;  %s1171_s26 = scalar_lea.vmem (!%p1268_p0), [#allocation2], %s624_s7 }
  0x51   : > { %974 = dma.done.wait (%p1269_p5), %s174_s10, 1024  }
  0x52   : > { %976 = vsyncadd (%p1269_p5), %s174_s10, 4294966272  ;;  %p1270_p10 = scmp.eq.s32.totalorder %s1049_s16, 0 }
  0x54   : > { %978 = dma.done.wait (%p1270_p10), [#allocation6], 1024   ;;  %p1271_p2 = pmov %p1270_p10 }
  0x55   : > { %v855_v0 = vld [vmem:[#allocation5] sm:$0xff]   ;;  %v856_v1 = vld [vmem:[#allocation5 + $0x8] sm:$0xff]   ;;  %v857_v2 = vld [vmem:[#allocation5 + $0x10] sm:$0xff]   ;;  %s1194_s8 = scalar_lea.vmem [#allocation7], %s624_s7  ;;  %s682_s4 = sshll.u32 %s1049_s16, 10 }
  0x56   : > { %980 = vsyncadd (%p1271_p2), [#allocation6], 4294966272  ;;  %746 = vmatprep.subr.bf16.mxu0 %v855_v0  ;;  %778 = vmatprep.subr.bf16.mxu1 %v855_v0  ;;  %v858_v3 = vld [vmem:[#allocation5 + $0x18] sm:$0xff]   ;;  %v863_v4 = vld [vmem:[%s1171_s26] sm:$0xff]   ;;  %s533_s9 = sshll.u32 %s1194_s8, 4  ;;  %s1207_s5 = scalar_lea.hbm %s1257_s3, %s682_s4  ;;  %s1202_s9 = int_to_ptr.vmem [resolvable:$true] %s533_s9 }
  0x57   : > { %747 = vmatpush3.bf16.msra.mxu0 %v855_v0  ;;  %786 = vmatpush3.bf16.msra.mxu1 %v855_v0  ;;  %v864_v5 = vld [vmem:[%s1171_s26 + $0x20] sm:$0xff]   ;;  %v860_v7 = vld [vmem:[#allocation5 + $0x28] sm:$0xff]   ;;  %v861_v8 = vld [vmem:[#allocation5 + $0x30] sm:$0xff]   ;;  %s520_s11 = scalar_lea.sflag [#allocation4], %s1165_s6  ;;  %s929_s27 = scalar_lea.vmem %s1202_s9, 1024 }
  0x58   : > { %748 = vmatprep.subr.bf16.mxu0 %v856_v1  ;;  %779 = vmatprep.subr.bf16.mxu1 %v856_v1  ;;  %v859_v6 = vld [vmem:[#allocation5 + $0x20] sm:$0xff]   ;;  %v862_v9 = vld [vmem:[#allocation5 + $0x38] sm:$0xff]   ;;  %v865_v10 = vld [vmem:[%s1171_s26 + $0x8] sm:$0xff]   ;;  %p930_p4 = scmp.ne.s32.totalorder %s1202_s9, %s929_s27  ;;  %s1005_s28 = smov [#allocation7]  }
  0x59   : > { %762 = vmatprep.mubr.bf16.mxu0 %v863_v4  ;;  %770 = vmatprep.mubr.bf16.mxu1 %v864_v5  ;;  %v866_v11 = vld [vmem:[%s1171_s26 + $0x28] sm:$0xff]   ;;  %v867_v12 = vld [vmem:[%s1171_s26 + $0x10] sm:$0xff]   ;;  %v869_v14 = vld [vmem:[%s1171_s26 + $0x18] sm:$0xff]   ;;  %s933_s23 = sshll.u32 %s1005_s28, 4  ;;  %s934_s23 = int_to_ptr.vmem [resolvable:$false] %s933_s23 }
  0x5a   : > { %v868_v13 = vld [vmem:[%s1171_s26 + $0x30] sm:$0xff]   ;;  %v870_v15 = vld [vmem:[%s1171_s26 + $0x38] sm:$0xff]   ;;  %v627_v17 = vld [vmem:[%s1256_s2] ss:$0 sm:$0xff]  ;;  %p931_p6 = pnand %p930_p4, %p1114_p12  ;;  %s935_s29 = scalar_lea.vmem %s934_s23, 2048 }
  0x5b   : > { %749 = vmatpush3.bf16.msra.mxu0 %v856_v1  ;;  %787 = vmatpush3.bf16.msra.mxu1 %v856_v1  ;;  %p936_p11 = scmp.lt.s32.totalorder %s1202_s9, %s934_s23  ;;  %p937_p13 = scmp.lt.s32.totalorder %s935_s29, %s929_s27 }
  0x5c   : > { %750 = vmatprep.subr.bf16.mxu0 %v857_v2  ;;  %780 = vmatprep.subr.bf16.mxu1 %v857_v2  ;;  %p932_p8 = pneg %p931_p6 }
  0x5d   : > { %p938_p3 = por %p937_p13, %p936_p11 }
  0x5f   : > { %751 = vmatpush3.bf16.msra.mxu0 %v857_v2  ;;  %788 = vmatpush3.bf16.msra.mxu1 %v857_v2  ;;  %p939_p7 = pnand %p938_p3, %p932_p8 }
  0x60   : > { %752 = vmatprep.subr.bf16.mxu0 %v858_v3  ;;  %781 = vmatprep.subr.bf16.mxu1 %v858_v3 }
  0x63   : > { %753 = vmatpush3.bf16.msra.mxu0 %v858_v3  ;;  %789 = vmatpush3.bf16.msra.mxu1 %v858_v3 }
  0x64   : > { %754 = vmatprep.subr.bf16.mxu0 %v859_v6  ;;  %782 = vmatprep.subr.bf16.mxu1 %v859_v6 }
  0x67   : > { %755 = vmatpush3.bf16.msra.mxu0 %v859_v6  ;;  %790 = vmatpush3.bf16.msra.mxu1 %v859_v6 }
  0x68   : > { %756 = vmatprep.subr.bf16.mxu0 %v860_v7  ;;  %783 = vmatprep.subr.bf16.mxu1 %v860_v7 }
  0x6b   : > { %757 = vmatpush3.bf16.msra.mxu0 %v860_v7  ;;  %791 = vmatpush3.bf16.msra.mxu1 %v860_v7 }
  0x6c   : > { %758 = vmatprep.subr.bf16.mxu0 %v861_v8  ;;  %784 = vmatprep.subr.bf16.mxu1 %v861_v8 }
  0x6f   : > { %759 = vmatpush3.bf16.msra.mxu0 %v861_v8  ;;  %792 = vmatpush3.bf16.msra.mxu1 %v861_v8 }
  0x70   : > { %760 = vmatprep.subr.bf16.mxu0 %v862_v9  ;;  %785 = vmatprep.subr.bf16.mxu1 %v862_v9 }
  0x73   : > { %761 = vmatpush3.bf16.msra.mxu0 %v862_v9  ;;  %793 = vmatpush3.bf16.msra.mxu1 %v862_v9 }
  0x76   : > { %763 = vmatmul.mubr.bf16.vlgmr.msra.gmra.mrb[0].mxu0 %v865_v10  ;;  %771 = vmatmul.mubr.bf16.vlgmr.msra.gmra.mrb[0].mxu1 %v866_v11 }
  0x77   : > { %766 = vmatprep.mubr.bf16.mxu0 %v867_v12  ;;  %774 = vmatprep.mubr.bf16.mxu1 %v868_v13 }
  0x7e   : > { %767 = vmatmul.mubr.bf16.gmra.mrb[4].mxu0 %v869_v14  ;;  %775 = vmatmul.mubr.bf16.gmra.mrb[4].mxu1 %v870_v15 }
 0x149   : > { %v764_v16 = vpop.f32.mrb[0].mxu0  ;;  %v772_v18 = vpop.f32.mrb[0].mxu1 }
 0x14a   : > { %v376_v19 = vpop.f32.mrb[1].mxu0  ;;  %v408_v20 = vpop.f32.mrb[1].mxu1  ;;  %v385_v23 = vadd.f32 %v764_v16, %v627_v17  ;;  %v417_v24 = vadd.f32 %v772_v18, %v627_v17 }
 0x14b   : > { %v765_v21 = vpop.f32.mrb[2].mxu0  ;;  %v773_v22 = vpop.f32.mrb[2].mxu1  ;;  %v377_v29 = vadd.f32 %v627_v17, %v376_v19  ;;  %v409_v30 = vadd.f32 %v627_v17, %v408_v20 }
 0x14c   : > { %v388_v25 = vadd.f32 %v765_v21, %v627_v17  ;;  %v420_v26 = vadd.f32 %v773_v22, %v627_v17  ;;  %v379_v27 = vpop.f32.mrb[3].mxu0  ;;  %v411_v28 = vpop.f32.mrb[3].mxu1 }
 0x14d   : > { %v380_v31 = vadd.f32 %v627_v17, %v379_v27  ;;  %v412_v32 = vadd.f32 %v627_v17, %v411_v28 }
 0x14e   : > { %v691_v33 = vpack.c.bf16 %v388_v25, %v385_v23  ;;  %v711_v34 = vpack.c.bf16 %v420_v26, %v417_v24 }
 0x14f   : > { %v686_v35 = vpack.c.bf16 %v380_v31, %v377_v29  ;;  %v706_v36 = vpack.c.bf16 %v412_v32, %v409_v30 }
 0x150   : > { %723 = vst [vmem:[%s1194_s8 + $0x8] sm:$0xff] %v691_v33   ;;  %727 = vst [vmem:[%s1194_s8 + $0x28] sm:$0xff] %v711_v34  }
 0x151   : > { %687 = vst [vmem:[%s1194_s8] sm:$0xff] %v686_v35   ;;  %726 = vst [vmem:[%s1194_s8 + $0x20] sm:$0xff] %v706_v36   ;;  %v768_v37 = vpop.f32.mrb[4].mxu0  ;;  %v776_v38 = vpop.f32.mrb[4].mxu1 }
 0x152   : > { %v392_v39 = vpop.f32.mrb[5].mxu0  ;;  %v424_v40 = vpop.f32.mrb[5].mxu1  ;;  %v401_v43 = vadd.f32 %v768_v37, %v627_v17  ;;  %v433_v44 = vadd.f32 %v776_v38, %v627_v17 }
 0x153   : > { %v769_v41 = vpop.f32.mrb[6].mxu0  ;;  %v777_v42 = vpop.f32.mrb[6].mxu1  ;;  %v393_v49 = vadd.f32 %v627_v17, %v392_v39  ;;  %v425_v50 = vadd.f32 %v627_v17, %v424_v40 }
 0x154   : > { %v404_v45 = vadd.f32 %v769_v41, %v627_v17  ;;  %v436_v46 = vadd.f32 %v777_v42, %v627_v17  ;;  %v395_v47 = vpop.f32.mrb[7].mxu0  ;;  %v427_v48 = vpop.f32.mrb[7].mxu1 }
 0x155   : > { %v396_v51 = vadd.f32 %v627_v17, %v395_v47  ;;  %v428_v52 = vadd.f32 %v627_v17, %v427_v48 }
 0x156   : > { %v701_v53 = vpack.c.bf16 %v404_v45, %v401_v43  ;;  %v721_v54 = vpack.c.bf16 %v436_v46, %v433_v44 }
 0x157   : > { %v696_v55 = vpack.c.bf16 %v396_v51, %v393_v49  ;;  %v716_v56 = vpack.c.bf16 %v428_v52, %v425_v50 }
 0x158   : > { %725 = vst [vmem:[%s1194_s8 + $0x18] sm:$0xff] %v701_v53   ;;  %729 = vst [vmem:[%s1194_s8 + $0x38] sm:$0xff] %v721_v54  }
 0x159   : > { %724 = vst [vmem:[%s1194_s8 + $0x10] sm:$0xff] %v696_v55   ;;  %728 = vst [vmem:[%s1194_s8 + $0x30] sm:$0xff] %v716_v56  }
 0x15a   : > { %942 = shalt.err (!%p939_p7)
}
 0x15b   : > { %s943_s30 = scalar_lea.hbm %s1207_s5, 1024  ;;  %s947_s10 = scalar_lea.hbm %s1257_s3, 3072 }
 0x15c   : > { %p944_p9 = scmp.ne.s32.totalorder %s1207_s5, %s943_s30  ;;  %p948_p5 = scmp.lt.u32.totalorder %s1207_s5, %s1257_s3 }
 0x15d   : > { %p949_p10 = scmp.lt.u32.totalorder %s947_s10, %s943_s30  ;;  %p951_p4 = scmp.lt.u32.totalorder %s943_s30, %s1207_s5 }
 0x15e   : > { %p945_p1 = pnand %p944_p9, %p1114_p12 }
 0x15f   : > { %p950_p2 = por %p949_p10, %p948_p5 }
 0x160   : > { %p946_p0 = pneg %p945_p1 }
 0x161   : > { %p952_p6 = por %p951_p4, %p950_p2 }
 0x163   : > { %p953_p8 = pnand %p952_p6, %p946_p0 }
 0x165   : > { %956 = shalt.err (!%p953_p8)
}
 0x166   : > { %s1006_s20 = smov 64   ;;  %s1007_s8 = smov 4  }
 0x167   : > { %800 = dma.vmem_to_hbm [thread:$0]  (%p1114_p12), %s1202_s9, 1024, %s1207_s5, %s520_s11, %s1006_s20, %s1006_s20, %s1007_s8  }
 0x168 PF: > { %p817_p11 = scmp.ge.s32.totalorder %s999_s15, 2  ;;  %s548_s4 = sand.u32 1, %s987_s12  }
 0x169   : > { %p1272_p13 = scmp.ne.s32.totalorder %s1262_s19, 0  ;;  %s549_s16 = scalar_lea.sflag [#allocation4], %s548_s4 }
 0x16b   : > { %p811_p3 = pnand %p817_p11, %p1272_p13 }
 0x16d   : > { %982 = dma.done.wait (!%p811_p3), %s549_s16, 1024  }
 0x16e   : > { %984 = vsyncadd (!%p811_p3), %s549_s16, 4294966272  ;;  %p17_p7 = scmp.ge.s32.totalorder %s1081_s24, 5   ;;  %s1273_s12 = smov %s991_s13 }
 0x16f   : > { %s1274_s13 = smov %s995_s14  ;;  %s1275_s14 = smov %s1110_s17 }
 0x170   : > { %s1276_s15 = smov %s1081_s24  ;;  %19 = sbr.rel (!%p17_p7) target bundleno = 6 (0x6), region = 81 }
 0x177   :  { %554 = vsyncpa [#allocation3], 1 }
 0x178   :  { %556 = vsyncpa [#allocation3 + $0x1], 1 }
 0x179   :  { %557 = vsyncpa [#allocation6], 1 }
 0x17a   :  { %558 = vsyncpa [#allocation4], 1 }
 0x17b   :  { %560 = vsyncpa [#allocation4 + $0x1], 1 }

</bundles_post_ra>
